<compile_context>
chip_gen: v7x
topology: tpu7x:2x2x1
jax: 0.10.0
libtpu: 0.0.40
codegen_flags: <defaults>
</compile_context>

<pallas_src>
import jax
import jax.numpy as jnp
from jax.experimental import pallas as pl
from jax.experimental.pallas import tpu as pltpu


def crnn_kernel(x_ref, w1_ref, b1_ref, w2_ref, b2_ref, o_ref):
    # x_ref: (TM, D), w1_ref: (D, H), b1_ref: (1, H), w2_ref: (H, O), b2_ref: (1, O)
    h = jnp.dot(x_ref[...], w1_ref[...], preferred_element_type=jnp.float32) + b1_ref[...]
    y = jnp.dot(h, w2_ref[...], preferred_element_type=jnp.float32) + b2_ref[...]
    y = jax.nn.sigmoid(y)
    o_ref[...] = jnp.clip(y, 1e-7, 1.0).astype(o_ref.dtype)


def _round_up(n, m):
    return ((n + m - 1) // m) * m


def _pick_tile_m(M, requested):
    """Multiple of 8 (sublane), as large as useful, but keep >=~8 grid steps for big M."""
    mp8 = _round_up(M, 8)
    tm = min(_round_up(max(requested, 8), 8), mp8)
    if mp8 >= 8 * 1024:
        # enough work: keep the grid long enough for megacore (v7x) + DMA/compute overlap,
        # without shrinking tiles below 1024 rows.
        tm = min(tm, max(1024, _round_up(pl.cdiv(mp8, 8), 8)))
    return tm


def crnn_forward(x, w1, b1, w2, b2, *, tile_m=4096):
    """x: (batch, time, inputdim) -> (batch, time, outputdim)."""
    batch, time, dim = x.shape
    hidden = w1.shape[1]
    outputdim = w2.shape[1]

    M = batch * time
    x2d = x.reshape(M, dim)

    tm = _pick_tile_m(M, tile_m)
    grid_m = pl.cdiv(M, tm)  # partial last tile is masked by Pallas -> no padding copy

    out = pl.pallas_call(
        crnn_kernel,
        out_shape=jax.ShapeDtypeStruct((M, outputdim), x.dtype),
        grid_spec=pltpu.PrefetchScalarGridSpec(
            num_scalar_prefetch=0,
            grid=(grid_m,),
            in_specs=[
                pl.BlockSpec((tm, dim), lambda i: (i, 0)),
                # weights/biases: constant block index -> stay resident in VMEM
                pl.BlockSpec((dim, hidden), lambda i: (0, 0)),
                pl.BlockSpec((1, hidden), lambda i: (0, 0)),
                pl.BlockSpec((hidden, outputdim), lambda i: (0, 0)),
                pl.BlockSpec((1, outputdim), lambda i: (0, 0)),
            ],
            out_specs=pl.BlockSpec((tm, outputdim), lambda i: (i, 0)),
            # TODO(synk): outputdim=10 (<128 lanes) makes the writeback a masked partial store;
            # a lane-dense repacked output slab would help only if stores ever dominate.
        ),
        compiler_params=pltpu.CompilerParams(
            dimension_semantics=("parallel",),      # shards M across v7x's 2 TensorCores
            vmem_limit_bytes=48 * 1024 * 1024,      # room for large tiles; < v7x 64 MiB physical
        ),
    )(x2d, w1, b1, w2, b2)

    out = out.reshape(batch, time, outputdim)
    # F.interpolate to the same temporal length (mode='linear', align_corners=False) is identity.
    return out


def init_params(key, inputdim, outputdim, hidden=20, dtype=jnp.float32):
    """Deterministic kaiming-uniform-style init (fan_in based), zero biases."""
    k1, k2 = jax.random.split(key)
    bound1 = jnp.sqrt(6.0 / inputdim)
    bound2 = jnp.sqrt(6.0 / hidden)
    # stored as (in, out) for the kernel's matmul layout
    w1 = jax.random.uniform(k1, (inputdim, hidden), dtype, -bound1, bound1)
    b1 = jnp.zeros((1, hidden), dtype)
    w2 = jax.random.uniform(k2, (hidden, outputdim), dtype, -bound2, bound2)
    b2 = jnp.zeros((1, outputdim), dtype)
    return w1, b1, w2, b2


def _reference(x, w1, b1, w2, b2):
    return jnp.clip(jax.nn.sigmoid((x @ w1 + b1[0]) @ w2 + b2[0]), 1e-7, 1.0)


if __name__ == "__main__":
    key = jax.random.PRNGKey(0)
    kx, kp, kx2 = jax.random.split(key, 3)

    batch, time, inputdim, outputdim = 2, 8, 16, 10
    x = jax.random.normal(kx, (batch, time, inputdim), jnp.float32)
    w1, b1, w2, b2 = init_params(kp, inputdim, outputdim)

    out = crnn_forward(x, w1, b1, w2, b2)
    out = jax.block_until_ready(out)
    assert out.shape == (batch, time, outputdim)
    assert jnp.allclose(out, _reference(x, w1, b1, w2, b2), atol=1e-5, rtol=1e-5)

    # exercise the no-padding / masked-tail path: M = 3*37 = 111 rows, tile_m=16 -> 7 grid steps,
    # last tile is partial (112 > 111) and must be masked on writeback.
    b2_, t2_ = 3, 37
    x2 = jax.random.normal(kx2, (b2_, t2_, inputdim), jnp.float32)
    out2 = jax.block_until_ready(crnn_forward(x2, w1, b1, w2, b2, tile_m=16))
    assert out2.shape == (b2_, t2_, outputdim)
    assert jnp.allclose(out2, _reference(x2, w1, b1, w2, b2), atol=1e-5, rtol=1e-5)

    print("KERNEL_OK")
</pallas_src>

<mosaic_0001>
module attributes {stable_mosaic.version = 11 : i64} {
  func.func @crnn_kernel(%arg0: i32, %arg1: memref<16x16xf32, #tpu.memory_space<vmem>>, %arg2: memref<16x20xf32, #tpu.memory_space<vmem>>, %arg3: memref<1x20xf32, #tpu.memory_space<vmem>>, %arg4: memref<20x10xf32, #tpu.memory_space<vmem>>, %arg5: memref<1x10xf32, #tpu.memory_space<vmem>>, %arg6: memref<16x10xf32, #tpu.memory_space<vmem>>) attributes {dimension_semantics = [#tpu.dimension_semantics<parallel>], iteration_bounds = array<i64: 1>, scalar_prefetch = 0 : i64, scratch_operands = 0 : i64, tpu.core_type = #tpu.core_type<tc>, window_params = [{transform_indices = @transform_0, window_bounds = array<i64: 16, 16>}, {pipeline_mode = #tpu.pipeline_mode<synchronous>, transform_indices = @transform_1, window_bounds = array<i64: 16, 20>}, {pipeline_mode = #tpu.pipeline_mode<synchronous>, transform_indices = @transform_2, window_bounds = array<i64: 1, 20>}, {pipeline_mode = #tpu.pipeline_mode<synchronous>, transform_indices = @transform_3, window_bounds = array<i64: 20, 10>}, {pipeline_mode = #tpu.pipeline_mode<synchronous>, transform_indices = @transform_4, window_bounds = array<i64: 1, 10>}, {transform_indices = @transform_5, window_bounds = array<i64: 16, 10>}]} {
    %c0 = arith.constant 0 : index
    %c0_0 = arith.constant 0 : index
    %0 = vector.load %arg1[%c0, %c0_0] : memref<16x16xf32, #tpu.memory_space<vmem>>, vector<16x16xf32>
    %c0_1 = arith.constant 0 : index
    %c0_2 = arith.constant 0 : index
    %1 = vector.load %arg2[%c0_1, %c0_2] : memref<16x20xf32, #tpu.memory_space<vmem>>, vector<16x20xf32>
    %cst = arith.constant dense<0.000000e+00> : vector<16x20xf32>
    %2 = tpu.matmul %0, %1, %cst {dimension_numbers = #tpu.dot_dimension_numbers<[1], [0], [0], [1], [0, 0, 1, 1], [], []>} : vector<16x16xf32>, vector<16x20xf32>, vector<16x20xf32> -> vector<16x20xf32>
    %c0_3 = arith.constant 0 : index
    %c0_4 = arith.constant 0 : index
    %3 = vector.load %arg3[%c0_3, %c0_4] : memref<1x20xf32, #tpu.memory_space<vmem>>, vector<1x20xf32>
    %4 = vector.broadcast %3 : vector<1x20xf32> to vector<16x20xf32>
    %5 = arith.addf %2, %4 : vector<16x20xf32>
    %c0_5 = arith.constant 0 : index
    %c0_6 = arith.constant 0 : index
    %6 = vector.load %arg4[%c0_5, %c0_6] : memref<20x10xf32, #tpu.memory_space<vmem>>, vector<20x10xf32>
    %cst_7 = arith.constant dense<0.000000e+00> : vector<16x10xf32>
    %7 = tpu.matmul %5, %6, %cst_7 {dimension_numbers = #tpu.dot_dimension_numbers<[1], [0], [0], [1], [0, 0, 1, 1], [], []>} : vector<16x20xf32>, vector<20x10xf32>, vector<16x10xf32> -> vector<16x10xf32>
    %c0_8 = arith.constant 0 : index
    %c0_9 = arith.constant 0 : index
    %8 = vector.load %arg5[%c0_8, %c0_9] : memref<1x10xf32, #tpu.memory_space<vmem>>, vector<1x10xf32>
    %9 = vector.broadcast %8 : vector<1x10xf32> to vector<16x10xf32>
    %10 = arith.addf %7, %9 : vector<16x10xf32>
    %11 = arith.negf %10 : vector<16x10xf32>
    %12 = math.exp %11 : vector<16x10xf32>
    %cst_10 = arith.constant 1.000000e+00 : f32
    %13 = vector.broadcast %cst_10 : f32 to vector<16x10xf32>
    %14 = arith.addf %13, %12 : vector<16x10xf32>
    %15 = arith.divf %13, %14 : vector<16x10xf32>
    %cst_11 = arith.constant 1.000000e-07 : f32
    %cst_12 = arith.constant 1.000000e+00 : f32
    %16 = vector.broadcast %cst_11 : f32 to vector<16x10xf32>
    %17 = arith.maximumf %16, %15 : vector<16x10xf32>
    %18 = vector.broadcast %cst_12 : f32 to vector<16x10xf32>
    %19 = arith.minimumf %18, %17 : vector<16x10xf32>
    %c0_13 = arith.constant 0 : index
    %c0_14 = arith.constant 0 : index
    %20 = vector.load %arg6[%c0_13, %c0_14] : memref<16x10xf32, #tpu.memory_space<vmem>>, vector<16x10xf32>
    tpu.vector_store %arg6[%c0_13, %c0_14], %19 {strides = array<i32>} : memref<16x10xf32, #tpu.memory_space<vmem>>, vector<16x10xf32>,
    return
  }
  func.func @transform_0(%arg0: i32) -> (i32, i32) {
    %c0_i32 = arith.constant 0 : i32
    %c0_i32_0 = arith.constant 0 : i32
    return %arg0, %c0_i32 : i32, i32
  }
  func.func @transform_1(%arg0: i32) -> (i32, i32) {
    %c0_i32 = arith.constant 0 : i32
    %c0_i32_0 = arith.constant 0 : i32
    %c0_i32_1 = arith.constant 0 : i32
    return %c0_i32, %c0_i32_0 : i32, i32
  }
  func.func @transform_2(%arg0: i32) -> (i32, i32) {
    %c0_i32 = arith.constant 0 : i32
    %c0_i32_0 = arith.constant 0 : i32
    %c0_i32_1 = arith.constant 0 : i32
    return %c0_i32, %c0_i32_0 : i32, i32
  }
  func.func @transform_3(%arg0: i32) -> (i32, i32) {
    %c0_i32 = arith.constant 0 : i32
    %c0_i32_0 = arith.constant 0 : i32
    %c0_i32_1 = arith.constant 0 : i32
    return %c0_i32, %c0_i32_0 : i32, i32
  }
  func.func @transform_4(%arg0: i32) -> (i32, i32) {
    %c0_i32 = arith.constant 0 : i32
    %c0_i32_0 = arith.constant 0 : i32
    %c0_i32_1 = arith.constant 0 : i32
    return %c0_i32, %c0_i32_0 : i32, i32
  }
  func.func @transform_5(%arg0: i32) -> (i32, i32) {
    %c0_i32 = arith.constant 0 : i32
    %c0_i32_0 = arith.constant 0 : i32
    return %arg0, %c0_i32 : i32, i32
  }
}

</mosaic_0001>

<bundles_post_ra>
// kernel: tpu_custom_call.1
= control target key start
LH: loop header
LB: loop body
LE: loop exit
PB: predicated region body
PF: predicated region fallthrough
CT: control target
= control target key end

     0   :  { %vm32_vm0 = vcmask 130048   ;;  %s394_s0 = inlined_call_operand.vmem [shape: f32[16,16], index: 0, kind: input, shape index: {}]   ;;  %s395_s1 = inlined_call_operand.vmem [shape: f32[16,20], index: 1, kind: input, shape index: {}]   ;;  %s396_s2 = inlined_call_operand.vmem [shape: f32[1,20], index: 2, kind: input, shape index: {}]   ;;  %s397_s3 = inlined_call_operand.vmem [shape: f32[20,10], index: 3, kind: input, shape index: {}]   ;;  %s398_s4 = inlined_call_operand.vmem [shape: f32[1,10], index: 4, kind: input, shape index: {}]   ;;  %s399_s5 = inlined_call_operand.hbm [shape: f32[16,10], index: 5, kind: output, shape index: {}]  }
   0x1   :  { %v23_v0 = vld [vmem:[%s395_s1] sm:$0xff]  ;;  %v24_v1 = vld [vmem:[%s395_s1 + $0x8] sm:$0xff] }
   0x2   :  { %v21_v2 = vld [vmem:[%s394_s0] sm:$0xff]  ;;  %v279_v3 = vpack.c.bf16 %v24_v1, %v23_v0  ;;  %v115_v5 = vld [vmem:[%s397_s3 + $0x8] sm:$0xff] }
   0x3   :  { %267 = vmatprep.mubr.msk.f32.mxu0 %vm32_vm0, %v21_v2  ;;  %v114_v4 = vld [vmem:[%s397_s3] sm:$0xff] }
   0x4   :  { %v283_v6 = vpack.c.bf16 %v115_v5, %v114_v4 }
   0x5   :  { %10 = vsyncpa [#allocation3], 0  ;;  %280 = vmatprep.subr.bf16.mxu0 %v279_v3  ;;  %v22_v7 = vld [vmem:[%s394_s0 + $0x8] sm:$0xff]  ;;  %v116_v8 = vld [vmem:[%s397_s3 + $0x10] sm:$0xf]  ;;  %vm131_vm1 = vcmask 1043456  }
   0x6   :  { %282 = vmatpush3.bf16.msra.mxu0 %v279_v3  ;;  %284 = vmatprep.subr.bf16.mxu1 %v283_v6  ;;  %v245_v9 = vld [vmem:[%s396_s2] ss:$0 sm:$0xff]  ;;  %vm124_vm2 = vcmask 162816   ;;  %s322_s2 = smov [#allocation2]   ;;  %vm226_vm3 = vcmask 80896  }
   0x7   :  { %286 = vmatpush3.bf16.msra.mxu1 %v283_v6  ;;  %v248_v14 = vld [vmem:[%s398_s4] ss:$0 sm:$0xff]  ;;  %s234_s3 = sshll.u32 %s322_s2, 4  ;;  %s235_s3 = int_to_ptr.vmem [resolvable:$true] %s234_s3 }
   0x8   :  { %274 = vmatprep.subr.msk.mxu1 %vm131_vm1, %v116_v8  ;;  %s298_s4 = scalar_lea.vmem %s235_s3, 256  ;;  %p303_p1 = scmp.lt.s32.totalorder %s235_s3, %s235_s3 }
   0x9   :  { %268 = vmatmul.mubr.msk.f32.vlgmr.msra.gmra.mrb[0].mxu0 %vm32_vm0, %v22_v7  ;;  %p299_p0 = scmp.ne.s32.totalorder %s235_s3, %s298_s4  ;;  %p304_p2 = scmp.lt.s32.totalorder %s298_s4, %s298_s4 }
   0xb   :  { %275 = vmatpush3.msk.msra.mxu1 %vm131_vm1, %v116_v8  ;;  %p305_p3 = por %p304_p2, %p303_p1 }
   0xd   :  { %p306_p4 = pnand %p305_p3, %p299_p0 }
  0xdc   :  { %v269_v10 = vpop.f32.mrb[0].mxu0 }
  0xdd   :  { %v105_v11 = vpop.f32.mrb[1].mxu0  ;;  %v111_v13 = vadd.f32 %v269_v10, %v245_v9 }
  0xde   :  { %v106_v12 = vadd.f32 %v245_v9, %v105_v11 }
  0xe0   :  { %276 = vmatprep.mubr.msk.f32.mxu1 %vm124_vm2, %v106_v12 }
  0xe1   :  { %277 = vmatmul.mubr.msk.f32.vlgmr.msra.gmra.mrb[0].mxu1 %vm124_vm2, %v111_v13 }
 0x1b4   :  { %v278_v15 = vpop.f32.mrb[0].mxu1 }
 0x1b5   :  { %v207_v16 = vadd.f32 %v278_v15, %v248_v14  ;;  %v201_v17 = vpop.f32.mrb[1].mxu1 }
 0x1b6   :  { %v202_v18 = vadd.f32 %v248_v14, %v201_v17 }
 0x1b7   :  { %v253_v19 = vmul.f32 -1.442695, %v207_v16 }
 0x1b8   :  { %v252_v20 = vmul.f32 -1.442695, %v202_v18 }
 0x1b9   :  { %290 = vpow2.f32 %v253_v19 }
 0x1ba   :  { %292 = vpow2.f32 %v252_v20 }
 0x1c3   :  { %v291_v21 = vpop.eup %290 }
 0x1c4   :  { %v293_v22 = vpop.eup %292  ;;  %v217_v23 = vadd.f32 1.0, %v291_v21 }
 0x1c5   :  { %v216_v24 = vadd.f32 1.0, %v293_v22 }
 0x1c6   :  { %294 = vrcp.f32 %v217_v23 }
 0x1c7   :  { %296 = vrcp.f32 %v216_v24 }
 0x1d0   :  { %v295_v25 = vpop.eup %294 }
 0x1d1   :  { %v297_v26 = vpop.eup %296  ;;  %v223_v27 = vmax.f32 %v295_v25, 1e-07 }
 0x1d2   :  { %v222_v28 = vmax.f32 %v297_v26, 1e-07 }
 0x1d3   :  { %v225_v29 = vmin.f32 %v223_v27, 1.0 }
 0x1d4   :  { %v224_v30 = vmin.f32 %v222_v28, 1.0 }
 0x1d5   :  { %228 = vst.msk [vmem:[#allocation2 + $0x8] sm:$0xff] %vm226_vm3, %v225_v29 }
 0x1d6   :  { %227 = vst.msk [vmem:[#allocation2] sm:$0xff] %vm226_vm3, %v224_v30 }
 0x1d7   :  { %309 = shalt.err (!%p306_p4)
}
 0x1d8   :  { %s310_s11 = scalar_lea.hbm %s399_s5, 256 }
 0x1d9   :  { %p311_p5 = scmp.ne.s32.totalorder %s399_s5, %s310_s11  ;;  %p314_p6 = scmp.lt.u32.totalorder %s310_s11, %s399_s5 }
 0x1db   :  { %p316_p7 = pnand %p314_p6, %p311_p5 }
 0x1dd   :  { %319 = shalt.err (!%p316_p7)
}
 0x1de   :  { %s323_s16 = smov 128   ;;  %s324_s17 = smov 8  }
 0x1df   :  { %240 = dma.vmem_to_hbm [thread:$0]  %s235_s3, 256, %s399_s5, [#allocation3], %s323_s16, %s323_s16, %s324_s17  }
 0x1e0   :  { %320 = dma.done.wait [#allocation3], 256  }
 0x1e1   :  { %321 = vsyncadd [#allocation3], 4294967040 }
 0x1e2   :  { %244 = vsyncpa [#allocation3], 1 }

</bundles_post_ra>
